<compile_context>
chip_gen: v6e
topology: v6e:2x2x1
jax: 0.10.0
libtpu: 0.0.40
codegen_flags: <defaults>
</compile_context>

<pallas_src>
import jax
import jax.numpy as jnp
from jax import lax
from jax.experimental import pallas as pl
from jax.experimental.pallas import tpu as pltpu


def _make_mlp_kernel(num_layers, relu_flags, compute_dtype):
    """Fused MLP kernel: refs = (x, w0, b0, w1, b1, ..., out).

    Weights are PyTorch-layout (out, in); dot_general contracts x's feature
    axis against w's `in` axis (i.e. x @ w.T) so no host-side transpose is
    needed.  Accumulation is always f32 via preferred_element_type.
    """

    def kernel(*refs):
        x_ref = refs[0]
        o_ref = refs[-1]
        param_refs = refs[1:-1]

        h = x_ref[...]
        for li in range(num_layers):
            w = param_refs[2 * li][...]       # (out_i, in_i)
            b = param_refs[2 * li + 1][...]   # (1, out_i) float32
            h = lax.dot_general(
                h.astype(compute_dtype), w,
                dimension_numbers=(((1,), (1,)), ((), ())),
                preferred_element_type=jnp.float32,
            )
            h = h + b                          # f32 bias add
            if relu_flags[li]:
                h = jnp.maximum(h, 0.0)
        o_ref[...] = h.astype(o_ref.dtype)

    return kernel


def mlp_forward(x, weights, biases, relu_flags, *,
                compute_dtype=jnp.float32, block_n=1024):
    """Runs the fused MLP Pallas kernel.

    Args:
      x: (N, C0) or (N, C0, 1, 1) activations.
      weights: list of PyTorch-layout (out_i, in_i) weight matrices.
      biases:  list of (out_i,) bias vectors.
      relu_flags: per-layer bool, whether ReLU follows that Linear.
      compute_dtype: dtype fed to the MXU (f32 or bf16); accumulation is f32.
      block_n: batch-tile size (rows per grid step), multiple of 8.
    Returns:
      (N, out_last) float32.
    """
    # Same squeeze semantics as MLP.forward for N x C x 1 x 1 inputs.
    if x.ndim > 2:
        assert all(d == 1 for d in x.shape[2:]), f"expected NxCx1x1, got {x.shape}"
        x = x.reshape((x.shape[0], x.shape[1]))

    num_layers = len(weights)
    n, c0 = x.shape
    out_dim = weights[-1].shape[0]

    x = jnp.asarray(x, compute_dtype)
    w_list = [jnp.asarray(w, compute_dtype) for w in weights]       # (out, in)
    b_list = [jnp.asarray(b, jnp.float32).reshape(1, -1) for b in biases]

    # Batch tile: whole array if it fits one tile, else a multiple-of-8 tile.
    tn = n if n <= block_n else block_n
    grid = (pl.cdiv(n, tn),)

    operands = [x]
    in_specs = [pl.BlockSpec((tn, c0), lambda i: (i, 0))]
    for w, b in zip(w_list, b_list):
        operands += [w, b]
        in_specs += [
            pl.BlockSpec(w.shape, lambda i: (0, 0)),   # resident across grid
            pl.BlockSpec(b.shape, lambda i: (0, 0)),
        ]

    kernel = _make_mlp_kernel(num_layers, tuple(relu_flags), compute_dtype)

    out = pl.pallas_call(
        kernel,
        grid=grid,
        in_specs=in_specs,
        out_specs=pl.BlockSpec((tn, out_dim), lambda i: (i, 0)),
        out_shape=jax.ShapeDtypeStruct((n, out_dim), jnp.float32),
        compiler_params=pltpu.CompilerParams(
            dimension_semantics=("parallel",),
        ),
    )(*operands)
    return out


def _init_linear_params(key, in_dim, out_dim, params_multiplier=1.0):
    """Deterministic init matching nn.Linear's uniform(-1/sqrt(fan_in), ...)."""
    kw, kb = jax.random.split(key)
    bound = 1.0 / jnp.sqrt(jnp.float32(in_dim))
    w = jax.random.uniform(kw, (out_dim, in_dim), jnp.float32, -bound, bound)
    b = jax.random.uniform(kb, (out_dim,), jnp.float32, -bound, bound)
    return w * params_multiplier, b * params_multiplier


def _reference_mlp(x, weights, biases, relu_flags):
    if x.ndim > 2:
        x = x.reshape((x.shape[0], x.shape[1]))
    h = x.astype(jnp.float32)
    for w, b, r in zip(weights, biases, relu_flags):
        h = h @ w.T + b
        if r:
            h = jnp.maximum(h, 0.0)
    return h


if __name__ == "__main__":
    # Config: dims=[32, 64, 16], use_relu=True, use_bias=True,
    # use_bn=False, use_dropout=False, skip_last_layer_relu_bn=True.
    dims = [32, 64, 16]
    use_relu = True
    skip_last_layer_relu_bn = True
    params_multiplier = 1.0

    num_layers = len(dims) - 1
    relu_flags = [
        use_relu and not (i == num_layers - 1 and skip_last_layer_relu_bn)
        for i in range(num_layers)
    ]

    key = jax.random.PRNGKey(0)
    keys = jax.random.split(key, num_layers + 1)

    weights, biases = [], []
    for i in range(num_layers):
        w, b = _init_linear_params(keys[i], dims[i], dims[i + 1], params_multiplier)
        weights.append(w)
        biases.append(b)

    # 4D N x C x 1 x 1 input, as the module accepts. Small batch but large
    # enough to exercise a multi-step grid (block_n=16 -> 4 grid steps).
    batch = 64
    x = jax.random.normal(keys[-1], (batch, dims[0], 1, 1), jnp.float32)

    ref = _reference_mlp(x, weights, biases, relu_flags)

    # f32 path: exact-ish parity with the reference.
    out_f32 = mlp_forward(x, weights, biases, relu_flags,
                          compute_dtype=jnp.float32, block_n=16)
    out_f32 = jax.block_until_ready(out_f32)
    assert out_f32.shape == (batch, dims[-1]), out_f32.shape
    assert jnp.allclose(out_f32, ref, atol=1e-5, rtol=1e-5), "f32 mismatch vs reference"

    # bf16 MXU-input path (halves activation/weight HBM traffic): looser tol.
    out_bf16 = mlp_forward(x, weights, biases, relu_flags,
                           compute_dtype=jnp.bfloat16, block_n=16)
    out_bf16 = jax.block_until_ready(out_bf16)
    assert out_bf16.shape == (batch, dims[-1]), out_bf16.shape
    assert jnp.allclose(out_bf16, ref, atol=5e-2, rtol=5e-2), "bf16 mismatch vs reference"

    print("KERNEL_OK")
</pallas_src>

<mosaic_0001>
module attributes {stable_mosaic.version = 11 : i64} {
  func.func @kernel(%arg0: i32, %arg1: memref<16x32xf32, #tpu.memory_space<vmem>>, %arg2: memref<64x32xf32, #tpu.memory_space<vmem>>, %arg3: memref<1x64xf32, #tpu.memory_space<vmem>>, %arg4: memref<16x64xf32, #tpu.memory_space<vmem>>, %arg5: memref<1x16xf32, #tpu.memory_space<vmem>>, %arg6: memref<16x16xf32, #tpu.memory_space<vmem>>) attributes {dimension_semantics = [#tpu.dimension_semantics<parallel>], iteration_bounds = array<i64: 4>, scalar_prefetch = 0 : i64, scratch_operands = 0 : i64, tpu.core_type = #tpu.core_type<tc>, window_params = [{transform_indices = @transform_0, window_bounds = array<i64: 16, 32>}, {pipeline_mode = #tpu.pipeline_mode<synchronous>, transform_indices = @transform_1, window_bounds = array<i64: 64, 32>}, {pipeline_mode = #tpu.pipeline_mode<synchronous>, transform_indices = @transform_2, window_bounds = array<i64: 1, 64>}, {pipeline_mode = #tpu.pipeline_mode<synchronous>, transform_indices = @transform_3, window_bounds = array<i64: 16, 64>}, {pipeline_mode = #tpu.pipeline_mode<synchronous>, transform_indices = @transform_4, window_bounds = array<i64: 1, 16>}, {transform_indices = @transform_5, window_bounds = array<i64: 16, 16>}]} {
    %c0 = arith.constant 0 : index
    %c0_0 = arith.constant 0 : index
    %0 = vector.load %arg1[%c0, %c0_0] : memref<16x32xf32, #tpu.memory_space<vmem>>, vector<16x32xf32>
    %c0_1 = arith.constant 0 : index
    %c0_2 = arith.constant 0 : index
    %1 = vector.load %arg2[%c0_1, %c0_2] : memref<64x32xf32, #tpu.memory_space<vmem>>, vector<64x32xf32>
    %c0_3 = arith.constant 0 : index
    %c0_4 = arith.constant 0 : index
    %2 = vector.load %arg3[%c0_3, %c0_4] : memref<1x64xf32, #tpu.memory_space<vmem>>, vector<1x64xf32>
    %cst = arith.constant dense<0.000000e+00> : vector<16x64xf32>
    %3 = tpu.matmul %0, %1, %cst {dimension_numbers = #tpu.dot_dimension_numbers<[1], [1], [0], [0], [0, 0, 1, 0], [], []>} : vector<16x32xf32>, vector<64x32xf32>, vector<16x64xf32> -> vector<16x64xf32>
    %4 = vector.broadcast %2 : vector<1x64xf32> to vector<16x64xf32>
    %5 = arith.addf %3, %4 : vector<16x64xf32>
    %cst_5 = arith.constant 0.000000e+00 : f32
    %6 = vector.broadcast %cst_5 : f32 to vector<16x64xf32>
    %7 = arith.maximumf %5, %6 : vector<16x64xf32>
    %c0_6 = arith.constant 0 : index
    %c0_7 = arith.constant 0 : index
    %8 = vector.load %arg4[%c0_6, %c0_7] : memref<16x64xf32, #tpu.memory_space<vmem>>, vector<16x64xf32>
    %c0_8 = arith.constant 0 : index
    %c0_9 = arith.constant 0 : index
    %9 = vector.load %arg5[%c0_8, %c0_9] : memref<1x16xf32, #tpu.memory_space<vmem>>, vector<1x16xf32>
    %cst_10 = arith.constant dense<0.000000e+00> : vector<16x16xf32>
    %10 = tpu.matmul %7, %8, %cst_10 {dimension_numbers = #tpu.dot_dimension_numbers<[1], [1], [0], [0], [0, 0, 1, 0], [], []>} : vector<16x64xf32>, vector<16x64xf32>, vector<16x16xf32> -> vector<16x16xf32>
    %11 = vector.broadcast %9 : vector<1x16xf32> to vector<16x16xf32>
    %12 = arith.addf %10, %11 : vector<16x16xf32>
    %c0_11 = arith.constant 0 : index
    %c0_12 = arith.constant 0 : index
    %13 = vector.load %arg6[%c0_11, %c0_12] : memref<16x16xf32, #tpu.memory_space<vmem>>, vector<16x16xf32>
    tpu.vector_store %arg6[%c0_11, %c0_12], %12 {strides = array<i32>} : memref<16x16xf32, #tpu.memory_space<vmem>>, vector<16x16xf32>,
    return
  }
  func.func @transform_0(%arg0: i32) -> (i32, i32) {
    %c0_i32 = arith.constant 0 : i32
    %c0_i32_0 = arith.constant 0 : i32
    return %arg0, %c0_i32 : i32, i32
  }
  func.func @transform_1(%arg0: i32) -> (i32, i32) {
    %c0_i32 = arith.constant 0 : i32
    %c0_i32_0 = arith.constant 0 : i32
    %c0_i32_1 = arith.constant 0 : i32
    return %c0_i32, %c0_i32_0 : i32, i32
  }
  func.func @transform_2(%arg0: i32) -> (i32, i32) {
    %c0_i32 = arith.constant 0 : i32
    %c0_i32_0 = arith.constant 0 : i32
    %c0_i32_1 = arith.constant 0 : i32
    return %c0_i32, %c0_i32_0 : i32, i32
  }
  func.func @transform_3(%arg0: i32) -> (i32, i32) {
    %c0_i32 = arith.constant 0 : i32
    %c0_i32_0 = arith.constant 0 : i32
    %c0_i32_1 = arith.constant 0 : i32
    return %c0_i32, %c0_i32_0 : i32, i32
  }
  func.func @transform_4(%arg0: i32) -> (i32, i32) {
    %c0_i32 = arith.constant 0 : i32
    %c0_i32_0 = arith.constant 0 : i32
    %c0_i32_1 = arith.constant 0 : i32
    return %c0_i32, %c0_i32_0 : i32, i32
  }
  func.func @transform_5(%arg0: i32) -> (i32, i32) {
    %c0_i32 = arith.constant 0 : i32
    %c0_i32_0 = arith.constant 0 : i32
    return %arg0, %c0_i32 : i32, i32
  }
}

</mosaic_0001>

<bundles_post_ra>
// kernel: tpu_custom_call.1
= control target key start
LH: loop header
LB: loop body
LE: loop exit
PB: predicated region body
PF: predicated region fallthrough
CT: control target
= control target key end

     0   :  { %s622_s18 = smov 0   ;;  %s700_s0 = inlined_call_operand.vmem [shape: f32[64,32], index: 0, kind: input, shape index: {}]   ;;  %s701_s1 = inlined_call_operand.vmem [shape: f32[64,32], index: 1, kind: input, shape index: {}]   ;;  %s702_s2 = inlined_call_operand.vmem [shape: f32[1,64], index: 2, kind: input, shape index: {}]   ;;  %s703_s3 = inlined_call_operand.vmem [shape: f32[16,64], index: 3, kind: input, shape index: {}]   ;;  %s704_s4 = inlined_call_operand.vmem [shape: f32[1,16], index: 4, kind: input, shape index: {}]   ;;  %s705_s5 = inlined_call_operand.vmem [shape: f32[64,16], index: 5, kind: output, shape index: {}]  }
   0x1 LB: > { %s509_s19 = sadd.s32 4294967295, %s590_s18   ;;  %p513_p0 = scmp.ge.s32.totalorder %s590_s18, 1  ;;  %s590_s18 = sphi %s622_s18, %s15_s18  }
   0x2   : > { %p188_p1 = scmp.lt.s32.totalorder %s590_s18, 5 }
   0x4   : > { %p189_p2 = pnand %p513_p0, %p188_p1 }
   0x5   : > { %s514_s24 = sshll.u32 (!%p189_p2), %s509_s19, 1 }
   0x6   : > { %192 = sbr.rel (%p189_p2) target bundleno = 442 (0x1ba), region = 40  ;;  %p217_p3 = scmp.lt.s32.totalorder (!%p189_p2), %s514_s24, 7 }
   0xb   : > { %v237_v0 = vld [vmem:[%s701_s1 + $0x38] sm:$0xff]  ;;  %vm245_vm0 = vcmask 261120   ;;  %v236_v1 = vld [vmem:[%s701_s1 + $0x30] sm:$0xff]  ;;  %s707_s24 = smov (!%p217_p3, %s514_s24), 7  ;;  %v235_v2 = vld [vmem:[%s701_s1 + $0x28] sm:$0xff]  ;;  %vm362_vm1 = vcmask 523264  }
   0xc   : > { %550 = vmatprep.subr.msk.mxu0 %vm245_vm0, %v237_v0  ;;  %s515_s27 = sshll.u32 %s707_s24, 3  ;;  %v234_v4 = vld [vmem:[%s701_s1 + $0x20] sm:$0xff]  ;;  %v233_v5 = vld [vmem:[%s701_s1 + $0x18] sm:$0xff]  ;;  %v232_v6 = vld [vmem:[%s701_s1 + $0x10] sm:$0xff]  ;;  %vm450_vm2 = vcmask 130048  }
   0xd   : > { %551 = vmatpush3.xpose.msk.msra.mxu0 %vm245_vm0, %v237_v0  ;;  %s220_s30 = scalar_lea.vmem %s700_s0, %s515_s27  ;;  %v231_v7 = vld [vmem:[%s701_s1 + $0x8] sm:$0xff]  ;;  %v230_v8 = vld [vmem:[%s701_s1] sm:$0xff]  ;;  %s226_s29 = scalar_lea.vmem %s705_s5, %s515_s27 }
   0xe   : > { %552 = vmatprep.subr.msk.mxu0 %vm245_vm0, %v236_v1  ;;  %v228_v3 = vld [vmem:[%s220_s30] sm:$0xff]  ;;  %v229_v9 = vld [vmem:[%s220_s30 + $0x8] sm:$0xff] }
   0xf   : > { %566 = vmatprep.mubr.msk.f32.mxu0 %vm245_vm0, %v228_v3  ;;  %v354_v10 = vld [vmem:[%s703_s3 + $0x8] sm:$0xff]  ;;  %v353_v11 = vld [vmem:[%s703_s3] sm:$0xff] }
  0x10   : > { %569 = vmatprep.subr.msk.mxu1 %vm362_vm1, %v354_v10  ;;  %v518_v12 = vld [vmem:[%s702_s2] ss:$0 sm:$0xff] }
  0x11   : > { %553 = vmatpush3.xpose.msk.msra.mxu0 %vm245_vm0, %v236_v1  ;;  %570 = vmatpush3.xpose.msk.msra.mxu1 %vm362_vm1, %v354_v10  ;;  %v529_v20 = vld [vmem:[%s704_s4] ss:$0 sm:$0xff] }
  0x12   : > { %554 = vmatprep.subr.msk.mxu0 %vm245_vm0, %v235_v2  ;;  %571 = vmatprep.subr.msk.mxu1 %vm362_vm1, %v353_v11 }
  0x15   : > { %555 = vmatpush3.xpose.msk.msra.mxu0 %vm245_vm0, %v235_v2  ;;  %572 = vmatpush3.xpose.msk.msra.mxu1 %vm362_vm1, %v353_v11 }
  0x16   : > { %556 = vmatprep.subr.msk.mxu0 %vm245_vm0, %v234_v4 }
  0x19   : > { %557 = vmatpush3.xpose.msk.msra.mxu0 %vm245_vm0, %v234_v4 }
  0x1a   : > { %558 = vmatprep.subr.msk.mxu0 %vm245_vm0, %v233_v5 }
  0x1d   : > { %559 = vmatpush3.xpose.msk.msra.mxu0 %vm245_vm0, %v233_v5 }
  0x1e   : > { %560 = vmatprep.subr.msk.mxu0 %vm245_vm0, %v232_v6 }
  0x21   : > { %561 = vmatpush3.xpose.msk.msra.mxu0 %vm245_vm0, %v232_v6 }
  0x22   : > { %562 = vmatprep.subr.msk.mxu0 %vm245_vm0, %v231_v7 }
  0x25   : > { %563 = vmatpush3.xpose.msk.msra.mxu0 %vm245_vm0, %v231_v7 }
  0x26   : > { %564 = vmatprep.subr.msk.mxu0 %vm245_vm0, %v230_v8 }
  0x29   : > { %565 = vmatpush3.xpose.msk.msra.mxu0 %vm245_vm0, %v230_v8 }
  0x2c   : > { %567 = vmatmul.mubr.msk.f32.vlgmr.msra.gmra.mxu0 %vm245_vm0, %v229_v9 }
  0xec   : > { %v568_v13 = vpop.f32.mrf.mxu0 }
  0xed   : > { %v348_v14 = vadd.f32 %v568_v13, %v518_v12 }
  0xee   : > { %v342_v15 = vpop.f32.mrf.mxu0 }
  0xef   : > { %v343_v16 = vadd.f32 %v518_v12, %v342_v15  ;;  %v352_v18 = vmax.f32 %v348_v14, 0.0 }
  0xf1   : > { %v351_v17 = vmax.f32 %v343_v16, 0.0 }
  0xf3   : > { %573 = vmatprep.mubr.msk.f32.mxu1 %vm362_vm1, %v351_v17 }
  0xf4   : > { %574 = vmatmul.mubr.msk.f32.vlgmr.msra.gmra.mxu1 %vm362_vm1, %v352_v18 }
 0x1b4   : > { %v575_v19 = vpop.f32.mrf.mxu1 }
 0x1b5   : > { %v447_v23 = vadd.f32 %v575_v19, %v529_v20 }
 0x1b6   : > { %v441_v21 = vpop.f32.mrf.mxu1 }
 0x1b7   : > { %v442_v22 = vadd.f32 %v529_v20, %v441_v21  ;;  %452 = vst.msk [vmem:[%s226_s29 + $0x8] sm:$0xff] %vm450_vm2, %v447_v23 }
 0x1b9   : > { %451 = vst.msk [vmem:[%s226_s29] sm:$0xff] %vm450_vm2, %v442_v22 }
 0x1ba PF: > { %s15_s18 = sadd.s32 1, %s590_s18  }
 0x1bb   : > { %p12_p4 = scmp.ge.s32.totalorder %s15_s18, 6  }
 0x1bd   :  { %14 = sbr.rel (!%p12_p4) target bundleno = 1 (0x1), region = 70 }

</bundles_post_ra>
